<compile_context>
chip_gen: v7x
topology: tpu7x:2x2x1
jax: 0.10.0
libtpu: 0.0.40
codegen_flags: <defaults>
</compile_context>

<pallas_src>
import functools
from typing import NamedTuple

import numpy as np
import jax
import jax.numpy as jnp
from jax.experimental import pallas as pl
from jax.experimental.pallas import tpu as pltpu

EPS = 1e-5  # PyTorch BatchNorm1d default


def _round_up(v: int, m: int) -> int:
    return (v + m - 1) // m * m


def _vmem_limit(need_bytes: int) -> int:
    # At least the default scoped limit everywhere (v5e 16 MiB, v6e/v7x 32 MiB), capped at
    # v7x's 64 MiB physical VMEM. 2x margin covers double-buffering / compiler scratch.
    return int(min(64 << 20, max(2 * need_bytes + (2 << 20), 32 << 20)))


def _pick_block_rows(n: int, c_in: int, c_out_p: int, x_bytes: int, out_bytes: int,
                     requested: int) -> int:
    if n <= 128:
        return n                                   # single tile, block == full batch dim
    cap = (n // 128) * 128
    rows = min(_round_up(max(requested, 128), 128), cap)
    budget = 24 << 20                              # streaming (double-buffered x + out) budget
    while rows > 128 and 2 * rows * (c_in * x_bytes + c_out_p * out_bytes) > budget:
        rows -= 128
    return rows


class PreparedParams(NamedTuple):
    gamma: jax.Array   # (1, C_in)      f32
    beta: jax.Array    # (1, C_in)      f32
    w_t: jax.Array     # (C_in, C_out_pad)  matmul dtype (bf16 by default)
    bias: jax.Array    # (1, C_out_pad) f32
    c_out: int         # true output width


def prepare_params(gamma, beta, weight, bias, *, matmul_dtype=jnp.bfloat16) -> PreparedParams:
    """One-time prep (outside the hot path): transpose W to (C_in, C_out), lane-pad C_out to a
    multiple of 128, cast W to the MXU dtype. bf16 is the right default on v5e/v6e/v7x (the MXU
    is bf16-native on all three); pass matmul_dtype=jnp.float32 for strict-accuracy use.
    # TODO(synk): on v7x, fp8 weights with a per-column scale would double MXU rate further."""
    c_out, c_in = weight.shape
    c_out_p = _round_up(c_out, 128)
    w_t = jnp.zeros((c_in, c_out_p), matmul_dtype).at[:, :c_out].set(weight.T.astype(matmul_dtype))
    bias_p = jnp.zeros((1, c_out_p), jnp.float32).at[0, :c_out].set(bias.astype(jnp.float32))
    return PreparedParams(gamma.astype(jnp.float32).reshape(1, c_in),
                          beta.astype(jnp.float32).reshape(1, c_in),
                          w_t, bias_p, c_out)


# --------------------------- kernels ---------------------------

def _stats_kernel(x_ref, gamma_ref, beta_ref, ss_ref, sum_ref, sq_ref, *, n_total, inv_n):
    """Pass 1: per-column sum / sum-of-squares over the batch, folded with gamma/beta into a
    single (scale, shift) pair written once at the last grid step."""
    tile = pl.program_id(0)

    @pl.when(tile == 0)
    def _init():
        sum_ref[...] = jnp.zeros_like(sum_ref)
        sq_ref[...] = jnp.zeros_like(sq_ref)

    x = x_ref[...].astype(jnp.float32)
    rows = x.shape[0]
    if n_total % rows != 0:
        # Ragged last tile: rows past n_total hold unspecified data; zero them so they do not
        # corrupt the batch statistics (we divide by the true N below).
        valid = n_total - tile * rows
        row_id = jax.lax.broadcasted_iota(jnp.int32, x.shape, 0)
        x = jnp.where(row_id < valid, x, 0.0)

    if rows % 8 == 0 and rows >= 8:
        # Sublane-aligned partial sums: pure VPU adds, no per-tile cross-sublane (XLU) reduce.
        acc_s = x[0:8]
        acc_q = x[0:8] * x[0:8]
        for r in range(8, rows, 8):
            blk = x[r:r + 8]
            acc_s = acc_s + blk
            acc_q = acc_q + blk * blk
        sum_ref[...] += acc_s
        sq_ref[...] += acc_q
    else:
        sum_ref[0:1, :] += jnp.sum(x, axis=0, keepdims=True)
        sq_ref[0:1, :] += jnp.sum(x * x, axis=0, keepdims=True)

    @pl.when(tile == pl.num_programs(0) - 1)
    def _finalize():
        # TODO(synk): E[x^2]-E[x]^2 can lose precision when per-column |mean| >> std; switch to
        # shifted sums if inputs are far from centered.
        total = jnp.sum(sum_ref[...], axis=0, keepdims=True)
        total_sq = jnp.sum(sq_ref[...], axis=0, keepdims=True)
        mean = total * inv_n
        var = total_sq * inv_n - mean * mean          # biased (training-mode) variance
        scale = gamma_ref[...] * jax.lax.rsqrt(var + EPS)
        shift = beta_ref[...] - mean * scale
        ss_ref[0:1, :] = scale.astype(ss_ref.dtype)
        ss_ref[1:2, :] = shift.astype(ss_ref.dtype)


def _apply_kernel(x_ref, ss_ref, w_ref, b_ref, o_ref):
    """Pass 2 (batch axis 'parallel'): y = relu(x*scale + shift) -> MXU matmul (+bias)."""
    x = x_ref[...].astype(ss_ref.dtype)               # bf16 elementwise path on v6e/v7x
    y = jnp.maximum(x * ss_ref[0:1, :] + ss_ref[1:2, :], 0)
    out = jnp.dot(y.astype(w_ref.dtype), w_ref[...], preferred_element_type=jnp.float32)
    o_ref[...] = (out + b_ref[...]).astype(o_ref.dtype)


def _fused_kernel(x_ref, gamma_ref, beta_ref, w_ref, b_ref, o_ref, *, inv_n, compute_dtype):
    """Fast path: x resident in VMEM, both phases in one kernel (x read from HBM once)."""
    xf = x_ref[...].astype(jnp.float32)
    mean = jnp.sum(xf, axis=0, keepdims=True) * inv_n
    var = jnp.sum(xf * xf, axis=0, keepdims=True) * inv_n - mean * mean
    scale = gamma_ref[...] * jax.lax.rsqrt(var + EPS)
    shift = beta_ref[...] - mean * scale
    y = jnp.maximum(xf.astype(compute_dtype) * scale.astype(compute_dtype)
                    + shift.astype(compute_dtype), 0)
    out = jnp.dot(y.astype(w_ref.dtype), w_ref[...], preferred_element_type=jnp.float32)
    o_ref[...] = (out + b_ref[...]).astype(o_ref.dtype)


# --------------------------- wrapper ---------------------------

def norm_act_lin(x, params: PreparedParams, *, block_n: int = 512,
                 out_dtype=jnp.float32, force_streaming: bool = False):
    """x: (N, C_in) -> (N, C_out). BatchNorm1d with training-mode batch stats -> ReLU -> Linear.
    Pass out_dtype=jnp.bfloat16 to halve output write traffic if the consumer accepts it."""
    n, c_in = x.shape
    gamma, beta, w_t, bias, c_out = params
    assert w_t.shape[0] == c_in, (w_t.shape, c_in)
    c_out_p = w_t.shape[1]
    compute_dtype = w_t.dtype
    inv_n = 1.0 / n
    x_bytes = x.dtype.itemsize
    w_bytes = w_t.dtype.itemsize
    comp_bytes = np.dtype(compute_dtype).itemsize
    out_bytes = np.dtype(out_dtype).itemsize

    # ---------- fast path: everything resident in VMEM, single fused call ----------
    fused_need = (n * c_in * (x_bytes + 4 + comp_bytes)            # x + f32 copy + y
                  + c_in * c_out_p * w_bytes
                  + n * c_out_p * (out_bytes + 4)                  # out buffer + f32 matmul result
                  + 8 * c_in * 4 + 2 * c_out_p * 4)
    if not force_streaming and fused_need <= (16 << 20):
        out = pl.pallas_call(
            functools.partial(_fused_kernel, inv_n=inv_n, compute_dtype=compute_dtype),
            out_shape=jax.ShapeDtypeStruct((n, c_out_p), out_dtype),
            grid=(1,),
            in_specs=[
                pl.BlockSpec((n, c_in), lambda i: (0, 0)),
                pl.BlockSpec((1, c_in), lambda i: (0, 0)),
                pl.BlockSpec((1, c_in), lambda i: (0, 0)),
                pl.BlockSpec((c_in, c_out_p), lambda i: (0, 0)),
                pl.BlockSpec((1, c_out_p), lambda i: (0, 0)),
            ],
            out_specs=pl.BlockSpec((n, c_out_p), lambda i: (0, 0)),
            compiler_params=pltpu.CompilerParams(
                dimension_semantics=("arbitrary",),
                vmem_limit_bytes=_vmem_limit(fused_need)),
        )(x, gamma, beta, w_t, bias)
        return out if c_out_p == c_out else out[:, :c_out]

    # ---------- streaming path: pass 1 (stats -> scale/shift), pass 2 (apply, parallel) ----------
    block_rows = _pick_block_rows(n, c_in, c_out_p, x_bytes, out_bytes, block_n)
    n_tiles = pl.cdiv(n, block_rows)

    stats_need = 2 * block_rows * c_in * x_bytes + 16 * c_in * 4 + 6 * c_in * 4
    ss = pl.pallas_call(
        functools.partial(_stats_kernel, n_total=n, inv_n=inv_n),
        out_shape=jax.ShapeDtypeStruct((2, c_in), compute_dtype),   # row 0: scale, row 1: shift
        grid=(n_tiles,),
        in_specs=[
            pl.BlockSpec((block_rows, c_in), lambda i: (i, 0)),     # x streamed
            pl.BlockSpec((1, c_in), lambda i: (0, 0)),              # gamma resident
            pl.BlockSpec((1, c_in), lambda i: (0, 0)),              # beta resident
        ],
        out_specs=pl.BlockSpec((2, c_in), lambda i: (0, 0)),        # written once at the end
        scratch_shapes=[pltpu.VMEM((8, c_in), jnp.float32),         # partial sum(x)
                        pltpu.VMEM((8, c_in), jnp.float32)],        # partial sum(x*x)
        compiler_params=pltpu.CompilerParams(
            dimension_semantics=("arbitrary",),                     # sequential reduction
            vmem_limit_bytes=_vmem_limit(stats_need)),
    )(x, gamma, beta)

    apply_need = (2 * block_rows * c_in * x_bytes
                  + 2 * c_in * c_out_p * w_bytes
                  + 2 * block_rows * c_out_p * out_bytes
                  + block_rows * c_out_p * 4
                  + 2 * c_in * comp_bytes + c_out_p * 4)
    # TODO(synk): if resident W^T alone approaches the VMEM limit (huge C_in*C_out), add a
    # C_out grid axis so W streams in (C_in, tile_cout) tiles.
    out = pl.pallas_call(
        _apply_kernel,
        out_shape=jax.ShapeDtypeStruct((n, c_out_p), out_dtype),
        grid=(n_tiles,),
        in_specs=[
            pl.BlockSpec((block_rows, c_in), lambda i: (i, 0)),     # x streamed
            pl.BlockSpec((2, c_in), lambda i: (0, 0)),              # scale/shift resident
            pl.BlockSpec((c_in, c_out_p), lambda i: (0, 0)),        # W^T resident (DMA'd once)
            pl.BlockSpec((1, c_out_p), lambda i: (0, 0)),           # bias resident
        ],
        out_specs=pl.BlockSpec((block_rows, c_out_p), lambda i: (i, 0)),
        compiler_params=pltpu.CompilerParams(
            dimension_semantics=("parallel",),                      # both TCs on v7x megacore
            vmem_limit_bytes=_vmem_limit(apply_need)),
    )(x, ss, w_t, bias)

    return out if c_out_p == c_out else out[:, :c_out]


if __name__ == "__main__":
    # Small, deliberately unaligned shapes (exercises ragged-tile masking + C_out lane padding).
    batch, in_channels, out_channels = 200, 64, 48

    key = jax.random.PRNGKey(0)
    kx, kg, kb, kw, kbias = jax.random.split(key, 5)
    x = jax.random.normal(kx, (batch, in_channels), dtype=jnp.float32)
    gamma = 1.0 + 0.1 * jax.random.normal(kg, (in_channels,), dtype=jnp.float32)
    beta = 0.1 * jax.random.normal(kb, (in_channels,), dtype=jnp.float32)
    bound = 1.0 / (in_channels ** 0.5)
    weight = jax.random.uniform(kw, (out_channels, in_channels),
                                minval=-bound, maxval=bound, dtype=jnp.float32)
    bias = jax.random.uniform(kbias, (out_channels,),
                              minval=-bound, maxval=bound, dtype=jnp.float32)

    # Pure-JAX reference (PyTorch training-mode BatchNorm1d -> ReLU -> Linear).
    mean = jnp.mean(x, axis=0, keepdims=True)
    var = jnp.mean((x - mean) ** 2, axis=0, keepdims=True)
    ref = (x - mean) / jnp.sqrt(var + EPS) * gamma + beta
    ref = jnp.dot(jnp.maximum(ref, 0.0), weight.T,
                  precision=jax.lax.Precision.HIGHEST) + bias

    # 1) Default bf16 MXU path; small problem -> fully-fused single call (x resident in VMEM).
    params_bf16 = prepare_params(gamma, beta, weight, bias)
    out_fused = norm_act_lin(x, params_bf16)
    jax.block_until_ready(out_fused)
    assert out_fused.shape == ref.shape, (out_fused.shape, ref.shape)
    assert jnp.allclose(out_fused, ref, atol=3e-2, rtol=3e-2), "fused bf16 path mismatch"

    # 2) Streaming two-pass path (stats kernel + 'parallel' apply kernel), ragged last tile.
    out_stream = norm_act_lin(x, params_bf16, block_n=128, force_streaming=True)
    jax.block_until_ready(out_stream)
    assert jnp.allclose(out_stream, ref, atol=3e-2, rtol=3e-2), "streaming bf16 path mismatch"

    # 3) Same streaming path with f32 weights for a tighter numerical check.
    params_f32 = prepare_params(gamma, beta, weight, bias, matmul_dtype=jnp.float32)
    out_f32 = norm_act_lin(x, params_f32, block_n=128, force_streaming=True)
    jax.block_until_ready(out_f32)
    assert jnp.allclose(out_f32, ref, atol=1e-2, rtol=1e-2), "streaming f32 path mismatch"

    print("KERNEL_OK")
</pallas_src>

<mosaic_0001>
module attributes {stable_mosaic.version = 11 : i64} {
  func.func @_fused_kernel(%arg0: i32, %arg1: memref<200x64xf32, #tpu.memory_space<vmem>>, %arg2: memref<1x64xf32, #tpu.memory_space<vmem>>, %arg3: memref<1x64xf32, #tpu.memory_space<vmem>>, %arg4: memref<64x128xbf16, #tpu.memory_space<vmem>>, %arg5: memref<1x128xf32, #tpu.memory_space<vmem>>, %arg6: memref<200x128xf32, #tpu.memory_space<vmem>>) attributes {dimension_semantics = [#tpu.dimension_semantics<arbitrary>], iteration_bounds = array<i64: 1>, scalar_prefetch = 0 : i64, scratch_operands = 0 : i64, tpu.core_type = #tpu.core_type<tc>, window_params = [{pipeline_mode = #tpu.pipeline_mode<synchronous>, transform_indices = @transform_0, window_bounds = array<i64: 200, 64>}, {pipeline_mode = #tpu.pipeline_mode<synchronous>, transform_indices = @transform_1, window_bounds = array<i64: 1, 64>}, {pipeline_mode = #tpu.pipeline_mode<synchronous>, transform_indices = @transform_2, window_bounds = array<i64: 1, 64>}, {pipeline_mode = #tpu.pipeline_mode<synchronous>, transform_indices = @transform_3, window_bounds = array<i64: 64, 128>}, {pipeline_mode = #tpu.pipeline_mode<synchronous>, transform_indices = @transform_4, window_bounds = array<i64: 1, 128>}, {pipeline_mode = #tpu.pipeline_mode<synchronous>, transform_indices = @transform_5, window_bounds = array<i64: 200, 128>}]} {
    %c0 = arith.constant 0 : index
    %c0_0 = arith.constant 0 : index
    %0 = vector.load %arg1[%c0, %c0_0] : memref<200x64xf32, #tpu.memory_space<vmem>>, vector<200x64xf32>
    %cst = arith.constant dense<0.000000e+00> : vector<64xf32>
    %1 = vector.multi_reduction <add>, %0, %cst [0] : vector<200x64xf32> to vector<64xf32>
    %2 = vector.shape_cast %1 : vector<64xf32> to vector<1x64xf32>
    %cst_1 = arith.constant 5.000000e-03 : f32
    %3 = vector.broadcast %cst_1 : f32 to vector<1x64xf32>
    %4 = arith.mulf %2, %3 : vector<1x64xf32>
    %5 = arith.mulf %0, %0 : vector<200x64xf32>
    %cst_2 = arith.constant dense<0.000000e+00> : vector<64xf32>
    %6 = vector.multi_reduction <add>, %5, %cst_2 [0] : vector<200x64xf32> to vector<64xf32>
    %7 = vector.shape_cast %6 : vector<64xf32> to vector<1x64xf32>
    %cst_3 = arith.constant 5.000000e-03 : f32
    %8 = vector.broadcast %cst_3 : f32 to vector<1x64xf32>
    %9 = arith.mulf %7, %8 : vector<1x64xf32>
    %10 = arith.mulf %4, %4 : vector<1x64xf32>
    %11 = arith.subf %9, %10 : vector<1x64xf32>
    %c0_4 = arith.constant 0 : index
    %c0_5 = arith.constant 0 : index
    %12 = vector.load %arg2[%c0_4, %c0_5] : memref<1x64xf32, #tpu.memory_space<vmem>>, vector<1x64xf32>
    %cst_6 = arith.constant 9.99999974E-6 : f32
    %13 = vector.broadcast %cst_6 : f32 to vector<1x64xf32>
    %14 = arith.addf %11, %13 : vector<1x64xf32>
    %15 = math.rsqrt %14 : vector<1x64xf32>
    %16 = arith.mulf %12, %15 : vector<1x64xf32>
    %c0_7 = arith.constant 0 : index
    %c0_8 = arith.constant 0 : index
    %17 = vector.load %arg3[%c0_7, %c0_8] : memref<1x64xf32, #tpu.memory_space<vmem>>, vector<1x64xf32>
    %18 = arith.mulf %4, %16 : vector<1x64xf32>
    %19 = arith.subf %17, %18 : vector<1x64xf32>
    %20 = arith.truncf %0 : vector<200x64xf32> to vector<200x64xbf16>
    %21 = arith.truncf %16 : vector<1x64xf32> to vector<1x64xbf16>
    %22 = vector.broadcast %21 : vector<1x64xbf16> to vector<200x64xbf16>
    %23 = arith.mulf %20, %22 : vector<200x64xbf16>
    %24 = arith.truncf %19 : vector<1x64xf32> to vector<1x64xbf16>
    %25 = vector.broadcast %24 : vector<1x64xbf16> to vector<200x64xbf16>
    %26 = arith.addf %23, %25 : vector<200x64xbf16>
    %cst_9 = arith.constant 0.000000e+00 : bf16
    %27 = vector.broadcast %cst_9 : bf16 to vector<200x64xbf16>
    %28 = arith.maximumf %26, %27 : vector<200x64xbf16>
    %c0_10 = arith.constant 0 : index
    %c0_11 = arith.constant 0 : index
    %29 = vector.load %arg4[%c0_10, %c0_11] : memref<64x128xbf16, #tpu.memory_space<vmem>>, vector<64x128xbf16>
    %cst_12 = arith.constant dense<0.000000e+00> : vector<200x128xf32>
    %30 = tpu.matmul %28, %29, %cst_12 {dimension_numbers = #tpu.dot_dimension_numbers<[1], [0], [0], [1], [0, 0, 1, 1], [], []>} : vector<200x64xbf16>, vector<64x128xbf16>, vector<200x128xf32> -> vector<200x128xf32>
    %c0_13 = arith.constant 0 : index
    %c0_14 = arith.constant 0 : index
    %31 = vector.load %arg5[%c0_13, %c0_14] : memref<1x128xf32, #tpu.memory_space<vmem>>, vector<1x128xf32>
    %32 = vector.broadcast %31 : vector<1x128xf32> to vector<200x128xf32>
    %33 = arith.addf %30, %32 : vector<200x128xf32>
    %c0_15 = arith.constant 0 : index
    %c0_16 = arith.constant 0 : index
    %34 = vector.load %arg6[%c0_15, %c0_16] : memref<200x128xf32, #tpu.memory_space<vmem>>, vector<200x128xf32>
    tpu.vector_store %arg6[%c0_15, %c0_16], %33 {strides = array<i32>} : memref<200x128xf32, #tpu.memory_space<vmem>>, vector<200x128xf32>,
    return
  }
  func.func @transform_0(%arg0: i32) -> (i32, i32) {
    %c0_i32 = arith.constant 0 : i32
    %c0_i32_0 = arith.constant 0 : i32
    %c0_i32_1 = arith.constant 0 : i32
    return %c0_i32, %c0_i32_0 : i32, i32
  }
  func.func @transform_1(%arg0: i32) -> (i32, i32) {
    %c0_i32 = arith.constant 0 : i32
    %c0_i32_0 = arith.constant 0 : i32
    %c0_i32_1 = arith.constant 0 : i32
    return %c0_i32, %c0_i32_0 : i32, i32
  }
  func.func @transform_2(%arg0: i32) -> (i32, i32) {
    %c0_i32 = arith.constant 0 : i32
    %c0_i32_0 = arith.constant 0 : i32
    %c0_i32_1 = arith.constant 0 : i32
    return %c0_i32, %c0_i32_0 : i32, i32
  }
  func.func @transform_3(%arg0: i32) -> (i32, i32) {
    %c0_i32 = arith.constant 0 : i32
    %c0_i32_0 = arith.constant 0 : i32
    %c0_i32_1 = arith.constant 0 : i32
    return %c0_i32, %c0_i32_0 : i32, i32
  }
  func.func @transform_4(%arg0: i32) -> (i32, i32) {
    %c0_i32 = arith.constant 0 : i32
    %c0_i32_0 = arith.constant 0 : i32
    %c0_i32_1 = arith.constant 0 : i32
    return %c0_i32, %c0_i32_0 : i32, i32
  }
  func.func @transform_5(%arg0: i32) -> (i32, i32) {
    %c0_i32 = arith.constant 0 : i32
    %c0_i32_0 = arith.constant 0 : i32
    %c0_i32_1 = arith.constant 0 : i32
    return %c0_i32, %c0_i32_0 : i32, i32
  }
}

</mosaic_0001>

<bundles_post_ra>
// kernel: tpu_custom_call.1
= control target key start
LH: loop header
LB: loop body
LE: loop exit
PB: predicated region body
PF: predicated region fallthrough
CT: control target
= control target key end

     0   :  { %v656_v1 = vmov 0.0   ;;  %vm47_vm0 = vcmask 523264   ;;  %vm657_vm1 = vmmov 0   ;;  %s1123_s0 = inlined_call_operand.vmem [shape: f32[200,64], index: 0, kind: input, shape index: {}]   ;;  %s1124_s1 = inlined_call_operand.vmem [shape: f32[1,64], index: 1, kind: input, shape index: {}]   ;;  %s1125_s2 = inlined_call_operand.vmem [shape: f32[1,64], index: 2, kind: input, shape index: {}]   ;;  %s1126_s3 = inlined_call_operand.vmem [shape: bf16[64,128], index: 3, kind: input, shape index: {}]   ;;  %s1127_s4 = inlined_call_operand.vmem [shape: f32[1,128], index: 4, kind: input, shape index: {}]   ;;  %s1128_s5 = inlined_call_operand.hbm [shape: f32[200,128], index: 5, kind: output, shape index: {}]  }
   0x1   :  { %v626_v0 = vld [vmem:[%s1126_s3] sm:$0xff]   ;;  %552 = vmatprep.subr.bf16.mxu0 %v656_v1  ;;  %612 = vmatprep.subr.bf16.mxu1 %v656_v1  ;;  %v627_v2 = vld [vmem:[%s1126_s3 + $0x8] sm:$0xff]   ;;  %v717_v5 = vld [vmem:[%s1123_s0 + $0x10] sm:$0xff] }
   0x2   :  { %553 = vmatpush3.bf16.msra.mxu0 %v626_v0  ;;  %616 = vmatpush3.bf16.msra.mxu1 %v626_v0  ;;  %v707_v3 = vld [vmem:[%s1123_s0] sm:$0xff]  ;;  %v712_v4 = vld [vmem:[%s1123_s0 + $0x8] sm:$0xff]  ;;  %v724_v6 = vld [vmem:[%s1123_s0 + $0x18] sm:$0xff]  ;;  %v51_v9 = vsel %vm47_vm0, %v717_v5, 0.0 }
   0x3   :  { %554 = vmatprep.subr.bf16.mxu0 %v656_v1  ;;  %613 = vmatprep.subr.bf16.mxu1 %v656_v1  ;;  %v48_v7 = vsel %vm47_vm0, %v707_v3, 0.0  ;;  %v49_v8 = vsel %vm47_vm0, %v712_v4, 0.0  ;;  %v628_v10 = vld [vmem:[%s1126_s3 + $0x10] sm:$0xff]   ;;  %v738_v11 = vld [vmem:[%s1123_s0 + $0x20] sm:$0xff]  ;;  %v53_v13 = vsel %vm47_vm0, %v724_v6, 0.0  ;;  %v747_v14 = vld [vmem:[%s1123_s0 + $0x28] sm:$0xff] }
   0x4   :  { %560 = vmatprep.mubr.msk.bf16.mxu0 %vm657_vm1, %v656_v1  ;;  %588 = vmatprep.mubr.msk.bf16.mxu1 %vm657_vm1, %v656_v1  ;;  %v50_v12 = vadd.f32 %v49_v8, %v48_v7  ;;  %v55_v16 = vsel %vm47_vm0, %v738_v11, 0.0  ;;  %v629_v17 = vld [vmem:[%s1126_s3 + $0x18] sm:$0xff]   ;;  %v757_v18 = vld [vmem:[%s1123_s0 + $0x30] sm:$0xff]  ;;  %v57_v20 = vsel %vm47_vm0, %v747_v14, 0.0 }
   0x5   :  { %v766_v21 = vld [vmem:[%s1123_s0 + $0x38] sm:$0xff]  ;;  %v59_v23 = vsel %vm47_vm0, %v757_v18, 0.0 }
   0x6   :  { %555 = vmatpush3.bf16.msra.mxu0 %v627_v2  ;;  %617 = vmatpush3.bf16.msra.mxu1 %v627_v2  ;;  %v52_v15 = vadd.f32 %v51_v9, %v50_v12 }
   0x7   :  { %556 = vmatprep.subr.bf16.mxu0 %v656_v1  ;;  %614 = vmatprep.subr.bf16.mxu1 %v656_v1 }
   0x8   :  { %v54_v19 = vadd.f32 %v53_v13, %v52_v15 }
   0xa   :  { %557 = vmatpush3.bf16.msra.mxu0 %v628_v10  ;;  %618 = vmatpush3.bf16.msra.mxu1 %v628_v10  ;;  %v56_v22 = vadd.f32 %v55_v16, %v54_v19 }
   0xb   :  { %558 = vmatprep.subr.bf16.mxu0 %v656_v1  ;;  %615 = vmatprep.subr.bf16.mxu1 %v656_v1 }
   0xc   :  { %10 = vsyncpa [#allocation3], 0  ;;  %v773_v24 = vld [vmem:[%s1123_s0 + $0x40] sm:$0xff]  ;;  %v58_v25 = vadd.f32 %v57_v20, %v56_v22  ;;  %v778_v26 = vld [vmem:[%s1123_s0 + $0x48] sm:$0xff]  ;;  %v61_v27 = vsel %vm47_vm0, %v766_v21, 0.0  ;;  %v104_v28 = vmul.f32 %v707_v3, %v707_v3  ;;  %v105_v29 = vmul.f32 %v712_v4, %v712_v4 }
   0xd   :  { %v106_v30 = vmul.f32 %v717_v5, %v717_v5  ;;  %v63_v32 = vsel %vm47_vm0, %v773_v24, 0.0  ;;  %v107_v33 = vmul.f32 %v724_v6, %v724_v6  ;;  %v795_v34 = vld [vmem:[%s1123_s0 + $0x50] sm:$0xff]  ;;  %v65_v36 = vsel %vm47_vm0, %v778_v26, 0.0  ;;  %v807_v41 = vld [vmem:[%s1123_s0 + $0x58] sm:$0xff]  ;;  %v817_v47 = vld [vmem:[%s1123_s0 + $0x60] sm:$0xff] }
   0xe   :  { %559 = vmatpush3.bf16.msra.mxu0 %v629_v17  ;;  %619 = vmatpush3.bf16.msra.mxu1 %v629_v17  ;;  %v60_v31 = vadd.f32 %v59_v23, %v58_v25  ;;  %v108_v37 = vmul.f32 %v738_v11, %v738_v11  ;;  %v129_v38 = vsel %vm47_vm0, %v104_v28, 0.0  ;;  %v130_v39 = vsel %vm47_vm0, %v105_v29, 0.0  ;;  %v822_v48 = vld [vmem:[%s1123_s0 + $0x68] sm:$0xff]  ;;  %v827_v49 = vld [vmem:[%s1123_s0 + $0x70] sm:$0xff]  ;;  %v832_v52 = vld [vmem:[%s1123_s0 + $0x78] sm:$0xff] }
   0xf   :  { %v132_v40 = vsel %vm47_vm0, %v106_v30, 0.0  ;;  %v131_v43 = vadd.f32 %v130_v39, %v129_v38  ;;  %v67_v44 = vsel %vm47_vm0, %v795_v34, 0.0  ;;  %v109_v45 = vmul.f32 %v747_v14, %v747_v14  ;;  %v855_v8 = vld [vmem:[%s1123_s0 + $0x80] sm:$0xff]  ;;  %v867_v15 = vld [vmem:[%s1123_s0 + $0x88] sm:$0xff]  ;;  %v872_v16 = vld [vmem:[%s1123_s0 + $0x90] sm:$0xff] }
  0x10   :  { %v62_v35 = vadd.f32 %v61_v27, %v60_v31  ;;  %v134_v46 = vsel %vm47_vm0, %v107_v33, 0.0  ;;  %v69_v53 = vsel %vm47_vm0, %v807_v41, 0.0  ;;  %v110_v54 = vmul.f32 %v757_v18, %v757_v18  ;;  %v877_v17 = vld [vmem:[%s1123_s0 + $0x98] sm:$0xff]  ;;  %v885_v25 = vld [vmem:[%s1123_s0 + $0xa0] sm:$0xff]  ;;  %v890_v27 = vld [vmem:[%s1123_s0 + $0xa8] sm:$0xff] }
  0x11   :  { %v133_v51 = vadd.f32 %v132_v40, %v131_v43  ;;  %v136_v55 = vsel %vm47_vm0, %v108_v37, 0.0  ;;  %v111_v57 = vmul.f32 %v766_v21, %v766_v21  ;;  %v71_v59 = vsel %vm47_vm0, %v817_v47, 0.0  ;;  %v908_v33 = vld [vmem:[%s1123_s0 + $0xb8] sm:$0xff] }
  0x12   :  { %v64_v42 = vadd.f32 %v63_v32, %v62_v35  ;;  %v73_v60 = vsel %vm47_vm0, %v822_v48, 0.0  ;;  %v75_v61 = vsel %vm47_vm0, %v827_v49, 0.0  ;;  %v138_v62 = vsel %vm47_vm0, %v109_v45, 0.0  ;;  %v903_v32 = vld [vmem:[%s1123_s0 + $0xb0] sm:$0xff] }
  0x13   :  { %v135_v58 = vadd.f32 %v134_v46, %v133_v51  ;;  %v77_v0 = vsel %vm47_vm0, %v832_v52, 0.0  ;;  %v112_v2 = vmul.f32 %v773_v24, %v773_v24  ;;  %v113_v9 = vmul.f32 %v778_v26, %v778_v26 }
  0x14   :  { %v66_v50 = vadd.f32 %v65_v36, %v64_v42  ;;  %v114_v10 = vmul.f32 %v795_v34, %v795_v34  ;;  %v140_v12 = vsel %vm47_vm0, %v110_v54, 0.0  ;;  %v194_v13 = vpack.c.bf16 %v712_v4, %v707_v3 }
  0x15   :  { %v137_v7 = vadd.f32 %v136_v55, %v135_v58  ;;  %v142_v22 = vsel %vm47_vm0, %v111_v57, 0.0  ;;  %v195_v23 = vpack.c.bf16 %v724_v6, %v717_v5  ;;  %v202_v28 = vpack.c.bf16 %v867_v15, %v855_v8 }
  0x16   :  { %v68_v56 = vadd.f32 %v67_v44, %v66_v50  ;;  %v196_v29 = vpack.c.bf16 %v747_v14, %v738_v11  ;;  %v203_v30 = vpack.c.bf16 %v877_v17, %v872_v16  ;;  %v197_v31 = vpack.c.bf16 %v766_v21, %v757_v18 }
  0x17   :  { %v139_v20 = vadd.f32 %v138_v62, %v137_v7  ;;  %v204_v37 = vpack.c.bf16 %v890_v27, %v885_v25  ;;  %v198_v38 = vpack.c.bf16 %v778_v26, %v773_v24  ;;  %v144_v39 = vsel %vm47_vm0, %v112_v2, 0.0 }
  0x18   :  { %v70_v63 = vadd.f32 %v69_v53, %v68_v56  ;;  %v205_v40 = vpack.c.bf16 %v908_v33, %v903_v32  ;;  %v199_v42 = vpack.c.bf16 %v807_v41, %v795_v34  ;;  %v200_v43 = vpack.c.bf16 %v822_v48, %v817_v47 }
  0x19   :  { %v141_v36 = vadd.f32 %v140_v12, %v139_v20  ;;  %v79_v46 = vsel %vm47_vm0, %v855_v8, 0.0  ;;  %v115_v50 = vmul.f32 %v807_v41, %v807_v41  ;;  %v146_v51 = vsel %vm47_vm0, %v113_v9, 0.0 }
  0x1a   :  { %v72_v19 = vadd.f32 %v71_v59, %v70_v63  ;;  %v81_v55 = vsel %vm47_vm0, %v867_v15, 0.0  ;;  %v116_v56 = vmul.f32 %v817_v47, %v817_v47  ;;  %v148_v57 = vsel %vm47_vm0, %v114_v10, 0.0 }
  0x1b   :  { %v143_v45 = vadd.f32 %v142_v22, %v141_v36  ;;  %v150_v62 = vsel %vm47_vm0, %v115_v50, 0.0  ;;  %v85_v2 = vsel %vm47_vm0, %v877_v17, 0.0  ;;  %v118_v7 = vmul.f32 %v827_v49, %v827_v49 }
  0x1c   :  { %v74_v35 = vadd.f32 %v73_v60, %v72_v19  ;;  %v83_v60 = vsel %vm47_vm0, %v872_v16, 0.0  ;;  %v152_v9 = vsel %vm47_vm0, %v116_v56, 0.0  ;;  %v87_v19 = vsel %vm47_vm0, %v885_v25, 0.0 }
  0x1d   :  { %v145_v54 = vadd.f32 %v144_v39, %v143_v45  ;;  %v119_v20 = vmul.f32 %v832_v52, %v832_v52  ;;  %v89_v39 = vsel %vm47_vm0, %v890_v27, 0.0  ;;  %v156_v45 = vsel %vm47_vm0, %v118_v7, 0.0 }
  0x1e   :  { %v76_v44 = vadd.f32 %v75_v61, %v74_v35  ;;  %v117_v61 = vmul.f32 %v822_v48, %v822_v48 }
  0x1f   :  { %v147_v59 = vadd.f32 %v146_v51, %v145_v54  ;;  %v91_v51 = vsel %vm47_vm0, %v903_v32, 0.0  ;;  %v158_v54 = vsel %vm47_vm0, %v119_v20, 0.0 }
  0x20   :  { %v78_v53 = vadd.f32 %v77_v0, %v76_v44  ;;  %v154_v22 = vsel %vm47_vm0, %v117_v61, 0.0  ;;  %v120_v44 = vmul.f32 %v855_v8, %v855_v8 }
  0x21   :  { %v149_v0 = vadd.f32 %v148_v57, %v147_v59  ;;  %v122_v59 = vmul.f32 %v872_v16, %v872_v16 }
  0x22   :  { %v80_v58 = vadd.f32 %v79_v46, %v78_v53  ;;  %v121_v53 = vmul.f32 %v867_v15, %v867_v15 }
  0x23   :  { %v151_v12 = vadd.f32 %v150_v62, %v149_v0  ;;  %v123_v0 = vmul.f32 %v877_v17, %v877_v17 }
  0x24   :  { %v82_v63 = vadd.f32 %v81_v55, %v80_v58  ;;  %v959_v55 = vld [vmem:[%s1123_s0 + $0xc0] sm:$0xff]  ;;  %v93_v58 = vsel %vm47_vm0, %v908_v33, 0.0 }
  0x25   :  { %v153_v36 = vadd.f32 %v152_v9, %v151_v12  ;;  %v164_v12 = vsel %vm47_vm0, %v122_v59, 0.0 }
  0x26   :  { %v84_v10 = vadd.f32 %v83_v60, %v82_v63  ;;  %v160_v60 = vsel %vm47_vm0, %v120_v44, 0.0  ;;  %v95_v63 = vsel %vm47_vm0, %v959_v55, 0.0  ;;  %v126_v44 = vmul.f32 %v903_v32, %v903_v32 }
  0x27   :  { %v155_v50 = vadd.f32 %v154_v22, %v153_v36  ;;  %v125_v22 = vmul.f32 %v890_v27, %v890_v27 }
  0x28   :  { %v86_v35 = vadd.f32 %v85_v2, %v84_v10  ;;  %v162_v2 = vsel %vm47_vm0, %v121_v53, 0.0  ;;  %v124_v10 = vmul.f32 %v885_v25, %v885_v25 }
  0x29   :  { %v157_v57 = vadd.f32 %v156_v45, %v155_v50  ;;  %v170_v53 = vsel %vm47_vm0, %v125_v22, 0.0 }
  0x2a   :  { %v88_v46 = vadd.f32 %v87_v19, %v86_v35  ;;  %v166_v35 = vsel %vm47_vm0, %v123_v0, 0.0  ;;  %v168_v45 = vsel %vm47_vm0, %v124_v10, 0.0 }
  0x2b   :  { %v159_v62 = vadd.f32 %v158_v54, %v157_v57  ;;  %v128_v57 = vmul.f32 %v959_v55, %v959_v55 }
  0x2c   :  { %v90_v56 = vadd.f32 %v89_v39, %v88_v46 }
  0x2d   :  { %v161_v9 = vadd.f32 %v160_v60, %v159_v62 }
  0x2e   :  { %v92_v61 = vadd.f32 %v91_v51, %v90_v56  ;;  %v127_v51 = vmul.f32 %v908_v33, %v908_v33 }
  0x2f   :  { %v163_v20 = vadd.f32 %v162_v2, %v161_v9 }
  0x30   :  { %v94_v7 = vadd.f32 %v93_v58, %v92_v61  ;;  %v172_v58 = vsel %vm47_vm0, %v126_v44, 0.0  ;;  %v174_v60 = vsel %vm47_vm0, %v127_v51, 0.0  ;;  %v187_v51 = vld [vmem:[%s1124_s1] sm:$0x1] }
  0x31   :  { %v165_v39 = vadd.f32 %v164_v12, %v163_v20 }
  0x32   :  { %v96_v19 = vadd.f32 %v95_v63, %v94_v7  ;;  %v176_v63 = vsel %vm47_vm0, %v128_v57, 0.0  ;;  %v191_v57 = vld [vmem:[%s1125_s2] sm:$0x1] }
  0x33   :  { %v167_v50 = vadd.f32 %v166_v35, %v165_v39 }
  0x34   :  { %v97_v36 = vrot.slane %v96_v19, 4 }
  0x35   :  { %v169_v56 = vadd.f32 %v168_v45, %v167_v50 }
  0x36   :  { %v98_v46 = vadd.f32 %v97_v36, %v96_v19 }
  0x37   :  { %v171_v59 = vadd.f32 %v170_v53, %v169_v56 }
  0x38   :  { %v99_v54 = vrot.slane %v98_v46, 2 }
  0x39   :  { %v173_v62 = vadd.f32 %v172_v58, %v171_v59 }
  0x3a   :  { %v100_v61 = vadd.f32 %v99_v54, %v98_v46  ;;  %v211_v46 = vlaneseq }
  0x3b   :  { %v175_v0 = vadd.f32 %v174_v60, %v173_v62 }
  0x3c   :  { %v101_v2 = vrot.slane %v100_v61, 1  ;;  %v212_v53 = vshrl.u32 %v211_v46, 7 }
  0x3d   :  { %v177_v7 = vadd.f32 %v176_v63, %v175_v0  ;;  %v201_v63 = vpack.c.bf16 %v832_v52, %v827_v49  ;;  %v658_v52 = vmov 0  }
  0x3e   :  { %v102_v10 = vadd.f32 %v101_v2, %v100_v61  ;;  %v213_v60 = vsub.s32 0, %v212_v53 }
  0x3f   :  { %v178_v9 = vrot.slane %v177_v7, 4 }
  0x40   :  { %v103_v20 = vmul.f32 0.005, %v102_v10 }
  0x41   :  { %v179_v12 = vadd.f32 %v178_v9, %v177_v7 }
  0x42   :  { %v185_v39 = vmul.f32 %v103_v20, %v103_v20 }
  0x43   :  { %v180_v19 = vrot.slane %v179_v12, 2 }
  0x45   :  { %v181_v22 = vadd.f32 %v180_v19, %v179_v12 }
  0x47   :  { %v182_v35 = vrot.slane %v181_v22, 1 }
  0x49   :  { %v183_v36 = vadd.f32 %v182_v35, %v181_v22 }
  0x4b   :  { %v184_v44 = vmul.f32 0.005, %v183_v36  ;;  %v206_v36 = vpack.c.bf16 %v959_v55, %v959_v55 }
  0x4d   :  { %v186_v45 = vsub.f32 %v184_v44, %v185_v39  ;;  %v1084_v44 = vld [vmem:[%s1127_s4] ss:$0 sm:$0xff]  ;;  %s659_s4 = smov [#allocation2]  }
  0x4e   :  { %s506_s27 = sshll.u32 %s659_s4, 4  ;;  %s507_s27 = int_to_ptr.vmem [resolvable:$true] %s506_s27 }
  0x4f   :  { %v188_v50 = vadd.f32 1e-05, %v186_v45  ;;  %s632_s28 = scalar_lea.vmem %s507_s27, 3200  ;;  %p637_p1 = scmp.lt.s32.totalorder %s507_s27, %s507_s27 }
  0x50   :  { %p633_p0 = scmp.ne.s32.totalorder %s507_s27, %s632_s28  ;;  %p638_p2 = scmp.lt.s32.totalorder %s632_s28, %s632_s28 }
  0x51   :  { %630 = vrsqrt.f32 %v188_v50 }
  0x52   :  { %p639_p3 = por %p638_p2, %p637_p1 }
  0x54   :  { %p640_p4 = pnand %p639_p3, %p633_p0 }
  0x5b   :  { %v631_v54 = vpop.eup %630 }
  0x5c   :  { %v190_v56 = vmul.f32 %v631_v54, %v187_v51 }
  0x5e   :  { %v192_v58 = vmul.f32 %v190_v56, %v103_v20  ;;  %v207_v59 = vpack.c.bf16 %v190_v56, %v190_v56 }
  0x60   :  { %v193_v61 = vsub.f32 %v191_v57, %v192_v58  ;;  %v209_v62 = vpack.i.b16 %v207_v59, %v207_v59 }
  0x62   :  { %v214_v0 = vrot.slane %v209_v62, %v213_v60  ;;  %v228_v2 = vpack.c.bf16 %v193_v61, %v193_v61 }
  0x64   :  { %v215_v7 = vmul.bf16 %v214_v0, %v194_v13  ;;  %v230_v9 = vpack.i.b16 %v228_v2, %v228_v2  ;;  %v222_v10 = vmul.bf16 %v214_v0, %v201_v63  ;;  %v216_v22 = vmul.bf16 %v214_v0, %v195_v23 }
  0x65   :  { %v223_v49 = vmul.bf16 %v214_v0, %v202_v28  ;;  %v217_v8 = vmul.bf16 %v214_v0, %v196_v29  ;;  %v224_v15 = vmul.bf16 %v214_v0, %v203_v30  ;;  %v218_v16 = vmul.bf16 %v214_v0, %v197_v31 }
  0x66   :  { %v999_v12 = vrot.slane %v230_v9, %v213_v60  ;;  %v225_v17 = vmul.bf16 %v214_v0, %v204_v37  ;;  %v219_v25 = vmul.bf16 %v214_v0, %v198_v38  ;;  %v226_v27 = vmul.bf16 %v214_v0, %v205_v40 }
  0x67   :  { %v220_v32 = vmul.bf16 %v214_v0, %v199_v42  ;;  %v227_v33 = vmul.bf16 %v214_v0, %v206_v36  ;;  %v221_v34 = vmul.bf16 %v214_v0, %v200_v43 }
  0x68   :  { %v236_v19 = vadd.bf16 %v999_v12, %v215_v7  ;;  %v243_v20 = vadd.bf16 %v999_v12, %v222_v10  ;;  %v237_v4 = vadd.bf16 %v999_v12, %v216_v22  ;;  %v244_v13 = vadd.bf16 %v999_v12, %v223_v49 }
  0x69   :  { %v238_v23 = vadd.bf16 %v999_v12, %v217_v8  ;;  %v245_v28 = vadd.bf16 %v999_v12, %v224_v15  ;;  %v239_v29 = vadd.bf16 %v999_v12, %v218_v16  ;;  %v246_v30 = vadd.bf16 %v999_v12, %v225_v17 }
  0x6a   :  { %v249_v35 = vmax.bf16 %v658_v52, %v236_v19  ;;  %v256_v3 = vmax.bf16 %v658_v52, %v243_v20  ;;  %v250_v5 = vmax.bf16 %v658_v52, %v237_v4  ;;  %v257_v6 = vmax.bf16 %v658_v52, %v244_v13 }
  0x6b   :  { %v251_v11 = vmax.bf16 %v658_v52, %v238_v23  ;;  %v258_v14 = vmax.bf16 %v658_v52, %v245_v28  ;;  %v252_v18 = vmax.bf16 %v658_v52, %v239_v29  ;;  %v259_v21 = vmax.bf16 %v658_v52, %v246_v30 }
  0x6c   :  { %561 = vmatmul.mubr.msk.bf16.vlgmr.msra.gmra.mrb[0].mxu0 %vm47_vm0, %v249_v35  ;;  %589 = vmatmul.mubr.msk.bf16.vlgmr.msra.gmra.mrb[0].mxu1 %vm47_vm0, %v256_v3  ;;  %v240_v31 = vadd.bf16 %v999_v12, %v219_v25  ;;  %v247_v37 = vadd.bf16 %v999_v12, %v226_v27  ;;  %v241_v38 = vadd.bf16 %v999_v12, %v220_v32 }
  0x6d   :  { %564 = vmatprep.mubr.msk.bf16.mxu0 %vm657_vm1, %v656_v1  ;;  %592 = vmatprep.mubr.msk.bf16.mxu1 %vm657_vm1, %v656_v1  ;;  %v248_v40 = vadd.bf16 %v999_v12, %v227_v33  ;;  %v242_v41 = vadd.bf16 %v999_v12, %v221_v34 }
  0x6e   :  { %v253_v24 = vmax.bf16 %v658_v52, %v240_v31  ;;  %v260_v26 = vmax.bf16 %v658_v52, %v247_v37  ;;  %v254_v55 = vmax.bf16 %v658_v52, %v241_v38 }
  0x6f   :  { %v261_v39 = vmax.bf16 %v658_v52, %v248_v40  ;;  %v255_v42 = vmax.bf16 %v658_v52, %v242_v41 }
  0x74   :  { %565 = vmatmul.mubr.msk.bf16.gmra.mrb[4].mxu0 %vm47_vm0, %v250_v5  ;;  %593 = vmatmul.mubr.msk.bf16.gmra.mrb[4].mxu1 %vm47_vm0, %v257_v6 }
  0x75   :  { %568 = vmatprep.mubr.msk.bf16.mxu0 %vm657_vm1, %v656_v1  ;;  %596 = vmatprep.mubr.msk.bf16.mxu1 %vm657_vm1, %v656_v1 }
  0x7c   :  { %569 = vmatmul.mubr.msk.bf16.gmra.mrb[8].mxu0 %vm47_vm0, %v251_v11  ;;  %597 = vmatmul.mubr.msk.bf16.gmra.mrb[8].mxu1 %vm47_vm0, %v258_v14 }
  0x7d   :  { %572 = vmatprep.mubr.msk.bf16.mxu0 %vm657_vm1, %v656_v1  ;;  %600 = vmatprep.mubr.msk.bf16.mxu1 %vm657_vm1, %v656_v1 }
  0x84   :  { %573 = vmatmul.mubr.msk.bf16.gmra.mrb[12].mxu0 %vm47_vm0, %v252_v18  ;;  %601 = vmatmul.mubr.msk.bf16.gmra.mrb[12].mxu1 %vm47_vm0, %v259_v21 }
  0x85   :  { %576 = vmatprep.mubr.msk.bf16.mxu0 %vm657_vm1, %v656_v1  ;;  %604 = vmatprep.mubr.msk.bf16.mxu1 %vm657_vm1, %v656_v1 }
  0x8c   :  { %577 = vmatmul.mubr.msk.bf16.gmra.mrb[16].mxu0 %vm47_vm0, %v253_v24  ;;  %605 = vmatmul.mubr.msk.bf16.gmra.mrb[16].mxu1 %vm47_vm0, %v260_v26 }
  0x8d   :  { %580 = vmatprep.mubr.msk.bf16.mxu0 %vm657_vm1, %v656_v1  ;;  %608 = vmatprep.mubr.msk.bf16.mxu1 %vm657_vm1, %v656_v1 }
  0x94   :  { %581 = vmatmul.mubr.msk.bf16.gmra.mrb[20].mxu0 %vm47_vm0, %v254_v55  ;;  %609 = vmatmul.mubr.msk.bf16.gmra.mrb[20].mxu1 %vm47_vm0, %v261_v39 }
  0x95   :  { %584 = vmatprep.mubr.msk.bf16.mxu0 %vm657_vm1, %v656_v1 }
  0x9c   :  { %585 = vmatmul.mubr.msk.bf16.gmra.mrb[24].mxu0 %vm47_vm0, %v255_v42 }
 0x13f   :  { %v374_v45 = vpop.f32.mrb[0].mxu0  ;;  %v430_v47 = vpop.f32.mrb[0].mxu1 }
 0x140   :  { %v375_v48 = vadd.f32 %v1084_v44, %v374_v45  ;;  %v562_v43 = vpop.f32.mrb[1].mxu0  ;;  %v431_v50 = vadd.f32 %v1084_v44, %v430_v47  ;;  %v590_v46 = vpop.f32.mrb[1].mxu1 }
 0x141   :  { %v377_v51 = vpop.f32.mrb[2].mxu0  ;;  %v433_v53 = vpop.f32.mrb[2].mxu1 }
 0x142   :  { %476 = vst [vmem:[#allocation2] sm:$0xff] %v375_v48  ;;  %v378_v1 = vadd.f32 %v1084_v44, %v377_v51  ;;  %v563_v54 = vpop.f32.mrb[3].mxu0  ;;  %490 = vst [vmem:[#allocation2 + $0x70] sm:$0xff] %v431_v50  ;;  %v434_v56 = vadd.f32 %v1084_v44, %v433_v53  ;;  %v591_v57 = vpop.f32.mrb[3].mxu1 }
 0x144   :  { %477 = vst [vmem:[#allocation2 + $0x8] sm:$0xff] %v378_v1  ;;  %491 = vst [vmem:[#allocation2 + $0x78] sm:$0xff] %v434_v56 }
 0x147   :  { %v382_v58 = vpop.f32.mrb[4].mxu0  ;;  %v438_v59 = vpop.f32.mrb[4].mxu1 }
 0x148   :  { %v383_v60 = vadd.f32 %v1084_v44, %v382_v58  ;;  %v566_v61 = vpop.f32.mrb[5].mxu0  ;;  %v439_v62 = vadd.f32 %v1084_v44, %v438_v59  ;;  %v594_v63 = vpop.f32.mrb[5].mxu1 }
 0x149   :  { %v385_v0 = vpop.f32.mrb[6].mxu0  ;;  %v441_v2 = vpop.f32.mrb[6].mxu1 }
 0x14a   :  { %478 = vst [vmem:[#allocation2 + $0x10] sm:$0xff] %v383_v60  ;;  %v386_v7 = vadd.f32 %v1084_v44, %v385_v0  ;;  %v567_v9 = vpop.f32.mrb[7].mxu0  ;;  %492 = vst [vmem:[#allocation2 + $0x80] sm:$0xff] %v439_v62  ;;  %v442_v10 = vadd.f32 %v1084_v44, %v441_v2  ;;  %v595_v12 = vpop.f32.mrb[7].mxu1 }
 0x14c   :  { %479 = vst [vmem:[#allocation2 + $0x18] sm:$0xff] %v386_v7  ;;  %493 = vst [vmem:[#allocation2 + $0x88] sm:$0xff] %v442_v10 }
 0x14f   :  { %v390_v19 = vpop.f32.mrb[8].mxu0  ;;  %v446_v20 = vpop.f32.mrb[8].mxu1 }
 0x150   :  { %v391_v22 = vadd.f32 %v1084_v44, %v390_v19  ;;  %v570_v49 = vpop.f32.mrb[9].mxu0  ;;  %v447_v52 = vadd.f32 %v1084_v44, %v446_v20  ;;  %v598_v35 = vpop.f32.mrb[9].mxu1 }
 0x151   :  { %v393_v3 = vpop.f32.mrb[10].mxu0  ;;  %v449_v4 = vpop.f32.mrb[10].mxu1 }
 0x152   :  { %480 = vst [vmem:[#allocation2 + $0x20] sm:$0xff] %v391_v22  ;;  %v394_v13 = vadd.f32 %v1084_v44, %v393_v3  ;;  %v571_v5 = vpop.f32.mrb[11].mxu0  ;;  %494 = vst [vmem:[#allocation2 + $0x90] sm:$0xff] %v447_v52  ;;  %v450_v6 = vadd.f32 %v1084_v44, %v449_v4  ;;  %v599_v8 = vpop.f32.mrb[11].mxu1 }
 0x154   :  { %481 = vst [vmem:[#allocation2 + $0x28] sm:$0xff] %v394_v13  ;;  %495 = vst [vmem:[#allocation2 + $0x98] sm:$0xff] %v450_v6 }
 0x157   :  { %v398_v15 = vpop.f32.mrb[12].mxu0  ;;  %v454_v23 = vpop.f32.mrb[12].mxu1 }
 0x158   :  { %v399_v28 = vadd.f32 %v1084_v44, %v398_v15  ;;  %v574_v11 = vpop.f32.mrb[13].mxu0  ;;  %v455_v14 = vadd.f32 %v1084_v44, %v454_v23  ;;  %v602_v16 = vpop.f32.mrb[13].mxu1 }
 0x159   :  { %v401_v17 = vpop.f32.mrb[14].mxu0  ;;  %v457_v29 = vpop.f32.mrb[14].mxu1 }
 0x15a   :  { %482 = vst [vmem:[#allocation2 + $0x30] sm:$0xff] %v399_v28  ;;  %v402_v30 = vadd.f32 %v1084_v44, %v401_v17  ;;  %v575_v18 = vpop.f32.mrb[15].mxu0  ;;  %496 = vst [vmem:[#allocation2 + $0xa0] sm:$0xff] %v455_v14  ;;  %v458_v21 = vadd.f32 %v1084_v44, %v457_v29  ;;  %v603_v25 = vpop.f32.mrb[15].mxu1 }
 0x15c   :  { %483 = vst [vmem:[#allocation2 + $0x38] sm:$0xff] %v402_v30  ;;  %497 = vst [vmem:[#allocation2 + $0xa8] sm:$0xff] %v458_v21 }
 0x15f   :  { %v406_v27 = vpop.f32.mrb[16].mxu0  ;;  %v462_v31 = vpop.f32.mrb[16].mxu1 }
 0x160   :  { %v407_v37 = vadd.f32 %v1084_v44, %v406_v27  ;;  %v578_v36 = vpop.f32.mrb[17].mxu0  ;;  %v463_v24 = vadd.f32 %v1084_v44, %v462_v31  ;;  %v606_v26 = vpop.f32.mrb[17].mxu1 }
 0x161   :  { %v409_v32 = vpop.f32.mrb[18].mxu0  ;;  %v465_v33 = vpop.f32.mrb[18].mxu1 }
 0x162   :  { %484 = vst [vmem:[#allocation2 + $0x40] sm:$0xff] %v407_v37  ;;  %v410_v38 = vadd.f32 %v1084_v44, %v409_v32  ;;  %v579_v40 = vpop.f32.mrb[19].mxu0  ;;  %498 = vst [vmem:[#allocation2 + $0xb0] sm:$0xff] %v463_v24  ;;  %v466_v55 = vadd.f32 %v1084_v44, %v465_v33  ;;  %v607_v39 = vpop.f32.mrb[19].mxu1 }
 0x164   :  { %485 = vst [vmem:[#allocation2 + $0x48] sm:$0xff] %v410_v38  ;;  %499 = vst [vmem:[#allocation2 + $0xb8] sm:$0xff] %v466_v55 }
 0x167   :  { %v414_v34 = vpop.f32.mrb[20].mxu0  ;;  %v470_v41 = vpop.f32.mrb[20].mxu1 }
 0x168   :  { %v415_v42 = vadd.f32 %v1084_v44, %v414_v34  ;;  %v582_v45 = vpop.f32.mrb[21].mxu0  ;;  %v471_v47 = vadd.f32 %v1084_v44, %v470_v41  ;;  %v610_v48 = vpop.f32.mrb[21].mxu1 }
 0x169   :  { %v417_v43 = vpop.f32.mrb[22].mxu0  ;;  %v473_v50 = vpop.f32.mrb[22].mxu1 }
 0x16a   :  { %486 = vst [vmem:[#allocation2 + $0x50] sm:$0xff] %v415_v42  ;;  %v418_v46 = vadd.f32 %v1084_v44, %v417_v43  ;;  %v583_v51 = vpop.f32.mrb[23].mxu0  ;;  %500 = vst [vmem:[#allocation2 + $0xc0] sm:$0xff] %v471_v47  ;;  %v611_v53 = vpop.f32.mrb[23].mxu1 }
 0x16c   :  { %487 = vst [vmem:[#allocation2 + $0x58] sm:$0xff] %v418_v46 }
 0x16f   :  { %v422_v1 = vpop.f32.mrb[24].mxu0 }
 0x170   :  { %v423_v54 = vadd.f32 %v1084_v44, %v422_v1  ;;  %v586_v56 = vpop.f32.mrb[25].mxu0 }
 0x171   :  { %v425_v57 = vpop.f32.mrb[26].mxu0 }
 0x172   :  { %488 = vst [vmem:[#allocation2 + $0x60] sm:$0xff] %v423_v54  ;;  %v426_v58 = vadd.f32 %v1084_v44, %v425_v57  ;;  %v587_v59 = vpop.f32.mrb[27].mxu0 }
 0x174   :  { %489 = vst [vmem:[#allocation2 + $0x68] sm:$0xff] %v426_v58 }
 0x175   :  { %643 = shalt.err (!%p640_p4)
}
 0x176   :  { %s644_s6 = scalar_lea.hbm %s1128_s5, 3200 }
 0x177   :  { %p645_p5 = scmp.ne.s32.totalorder %s1128_s5, %s644_s6  ;;  %p648_p6 = scmp.lt.u32.totalorder %s644_s6, %s1128_s5 }
 0x179   :  { %p650_p7 = pnand %p648_p6, %p645_p5 }
 0x17b   :  { %653 = shalt.err (!%p650_p7)
}
 0x17c   :  { %s660_s11 = smov 128   ;;  %s661_s12 = smov 8  }
 0x17d   :  { %512 = dma.vmem_to_hbm [thread:$0]  %s507_s27, 3200, %s1128_s5, [#allocation3], %s660_s11, %s660_s11, %s661_s12  }
 0x17e   :  { %654 = dma.done.wait [#allocation3], 3200  }
 0x17f   :  { %655 = vsyncadd [#allocation3], 4294964096 }
 0x180   :  { %516 = vsyncpa [#allocation3], 1 }

</bundles_post_ra>
